<compile_context>
chip_gen: v7x
topology: tpu7x:2x2x1
jax: 0.10.0
libtpu: 0.0.40
codegen_flags: <defaults>
</compile_context>

<pallas_src>
import jax
import jax.numpy as jnp
from jax.experimental import pallas as pl
from jax.experimental.pallas import tpu as pltpu

LN_EPS = 1e-5  # PyTorch nn.LayerNorm default


# --------------------------- in-kernel math helpers ---------------------------

def _erf(x):
    # Abramowitz & Stegun 7.1.26 rational approximation of erf (exact to ~f32 ulp).
    a1, a2, a3, a4, a5 = 0.254829592, -0.284496736, 1.421413741, -1.453152027, 1.061405429
    p = 0.3275911
    sign = jnp.where(x >= 0.0, 1.0, -1.0)
    ax = jnp.abs(x)
    t = 1.0 / (1.0 + p * ax)
    poly = ((((a5 * t + a4) * t + a3) * t + a2) * t + a1) * t
    return sign * (1.0 - poly * jnp.exp(-ax * ax))  # exp lands on the otherwise-idle EUP slot


def _gelu_exact(x):
    # PyTorch nn.GELU() default: 0.5 * x * (1 + erf(x / sqrt(2)))
    return 0.5 * x * (1.0 + _erf(x * 0.7071067811865476))


# --------------------------- parameter slab layout ---------------------------

def _round8(n):
    return ((n + 7) // 8) * 8


def _make_layout(esm_dim, n_genes, latent_dim):
    L = latent_dim
    # (name, k_rows, n_cols) for every matmul weight used by the kernel.
    w_dims = [
        ("W1e", esm_dim, 2 * L), ("W2e", 2 * L, L),
        ("W1v", n_genes, L), ("W2v", L, L),
        ("W_attn", L, L),                 # folded Wv@Wo (seq_len==1 attention)
        ("Wo1", 2 * L, L), ("Wo2", L, L),
    ]
    w_slots, off = {}, 0
    for name, k, n in w_dims:
        w_slots[name] = (off, k, n)
        off += _round8(k)                 # sublane-tile aligned row offsets
    w_rows = off
    w_width = max(n for _, _, n in w_dims)

    v_dims = [
        ("b1e", 2 * L), ("g1e", 2 * L), ("be1e", 2 * L),
        ("b2e", L), ("g2e", L), ("be2e", L),
        ("b1v", L), ("g1v", L), ("be1v", L),
        ("b2v", L), ("g2v", L), ("be2v", L),
        ("b_att", L), ("g_att", L), ("be_att", L),
        ("bo1", L), ("go1", L), ("beo1", L),
        ("bo2", L),
    ]
    v_slots = {name: (i, d) for i, (name, d) in enumerate(v_dims)}
    v_rows = len(v_dims)
    v_width = max(d for _, d in v_dims)
    return dict(w_slots=w_slots, w_rows=w_rows, w_width=w_width,
                v_slots=v_slots, v_rows=v_rows, v_width=v_width)


# --------------------------- single fused Pallas kernel ---------------------------

def _make_kernel(layout):
    WS = layout["w_slots"]   # name -> (row_off, k, n)   static Python ints
    VS = layout["v_slots"]   # name -> (row, d)

    def kernel(x_esm_ref, x_val_ref, w_ref, v_ref, out_ref):
        def W(name):
            off, k, n = WS[name]
            return w_ref[off:off + k, :n]        # static slice of the packed weight slab

        def V(name):
            r, d = VS[name]
            return v_ref[r:r + 1, :d]            # (1, d) row; broadcasts against (B, d)

        def affine(x, wn, bn):
            # MXU matmul, f32 accumulation; bias add on VPU.
            return jnp.dot(x, W(wn), preferred_element_type=jnp.float32) + V(bn)

        def lnorm(h, gn, bn):
            mean = jnp.mean(h, axis=-1, keepdims=True)
            var = jnp.mean((h - mean) ** 2, axis=-1, keepdims=True)
            return (h - mean) * jax.lax.rsqrt(var + LN_EPS) * V(gn) + V(bn)

        # esm_encoder: Linear -> LN -> GELU -> (Dropout=id) -> Linear -> LN
        h = _gelu_exact(lnorm(affine(x_esm_ref[...], "W1e", "b1e"), "g1e", "be1e"))
        h_esm = lnorm(affine(h, "W2e", "b2e"), "g2e", "be2e")

        # value_encoder: Linear -> LN -> GELU -> (Dropout=id) -> Linear -> LN
        h = _gelu_exact(lnorm(affine(x_val_ref[...], "W1v", "b1v"), "g1v", "be1v"))
        h_val = lnorm(affine(h, "W2v", "b2v"), "g2v", "be2v")

        # cross attention, seq_len == 1: softmax over one key == 1, so the whole block
        # reduces exactly to out_proj(value_proj(h_val)) -> pre-folded affine, then LN.
        h_att = lnorm(affine(h_val, "W_attn", "b_att"), "g_att", "be_att")

        # output_proj: single K=2L MXU pass on an in-kernel lane-concat (no HBM concat,
        # one matmul instead of two split dots -> fewer MRF drains on v5e/v6e).
        h_cat = jnp.concatenate([h_esm, h_att], axis=-1)
        h = jnp.dot(h_cat, W("Wo1"), preferred_element_type=jnp.float32) + V("bo1")
        h = _gelu_exact(lnorm(h, "go1", "beo1"))

        # final Linear + residual h_esm
        out = jnp.dot(h, W("Wo2"), preferred_element_type=jnp.float32) + V("bo2") + h_esm
        out_ref[...] = out.astype(out_ref.dtype)

    return kernel


# --------------------------- public builder ---------------------------

def make_perturbation_encoder(esm_dim, n_genes, latent_dim):
    """Returns (prepare_params, forward). prepare_params is one-time; forward is hot-path."""
    layout = _make_layout(esm_dim, n_genes, latent_dim)
    kernel = _make_kernel(layout)

    def prepare_params(p):
        # One-time fold + pack (NOT on the per-call path).
        W_attn = p["Wv_attn"] @ p["Wo_attn"]                       # exact seq_len==1 fold
        b_att = p["bv_attn"] @ p["Wo_attn"] + p["bo_attn"]

        weights = dict(W1e=p["W1e"], W2e=p["W2e"], W1v=p["W1v"], W2v=p["W2v"],
                       W_attn=W_attn, Wo1=p["Wo1"], Wo2=p["Wo2"])
        vecs = dict(p)
        vecs["b_att"] = b_att

        wslab = jnp.zeros((layout["w_rows"], layout["w_width"]), jnp.float32)
        for name, (off, k, n) in layout["w_slots"].items():
            wslab = wslab.at[off:off + k, :n].set(weights[name].astype(jnp.float32))
        vslab = jnp.zeros((layout["v_rows"], layout["v_width"]), jnp.float32)
        for name, (r, d) in layout["v_slots"].items():
            vslab = vslab.at[r, :d].set(vecs[name].astype(jnp.float32))
        return dict(wslab=jax.device_put(wslab), vslab=jax.device_put(vslab))

    @jax.jit
    def forward(packed, esm_embeddings, perturbation_values):
        B = esm_embeddings.shape[0]
        vmem = pl.BlockSpec(memory_space=pltpu.MemorySpace.VMEM)   # whole array resident in VMEM
        return pl.pallas_call(
            kernel,
            out_shape=jax.ShapeDtypeStruct((B, latent_dim), jnp.float32),
            in_specs=[vmem, vmem, vmem, vmem],
            out_specs=vmem,
        )(esm_embeddings, perturbation_values, packed["wslab"], packed["vslab"])

    return prepare_params, forward


# --------------------------- params + pure-JAX reference ---------------------------

def init_params(key, esm_dim, n_genes, latent_dim):
    L = latent_dim
    keys = iter(jax.random.split(key, 40))

    def lin(din, dout):
        bound = 1.0 / float(din) ** 0.5  # PyTorch nn.Linear default init range
        W = jax.random.uniform(next(keys), (din, dout), jnp.float32, -bound, bound)
        b = jax.random.uniform(next(keys), (dout,), jnp.float32, -bound, bound)
        return W, b

    def ln(d):
        return jnp.ones((d,), jnp.float32), jnp.zeros((d,), jnp.float32)

    p = {}
    # esm_encoder
    p["W1e"], p["b1e"] = lin(esm_dim, 2 * L); p["g1e"], p["be1e"] = ln(2 * L)
    p["W2e"], p["b2e"] = lin(2 * L, L);       p["g2e"], p["be2e"] = ln(L)
    # value_encoder
    p["W1v"], p["b1v"] = lin(n_genes, L);     p["g1v"], p["be1v"] = ln(L)
    p["W2v"], p["b2v"] = lin(L, L);           p["g2v"], p["be2v"] = ln(L)
    # cross_attention: q/k projections are only used by the reference (they cancel exactly)
    p["Wq_attn"], p["bq_attn"] = lin(L, L)
    p["Wk_attn"], p["bk_attn"] = lin(L, L)
    p["Wv_attn"], p["bv_attn"] = lin(L, L)
    p["Wo_attn"], p["bo_attn"] = lin(L, L)
    p["g_att"], p["be_att"] = ln(L)           # attention_norm
    # output_proj
    p["Wo1"], p["bo1"] = lin(2 * L, L);       p["go1"], p["beo1"] = ln(L)
    p["Wo2"], p["bo2"] = lin(L, L)
    return p


def _reference_forward(p, x_esm, x_val, n_heads):
    """Faithful eval-mode reference (full multi-head attention, exact-erf GELU)."""
    gelu = lambda t: jax.nn.gelu(t, approximate=False)

    def ln(t, g, b):
        m = t.mean(-1, keepdims=True)
        v = ((t - m) ** 2).mean(-1, keepdims=True)
        return (t - m) / jnp.sqrt(v + LN_EPS) * g + b

    h = gelu(ln(x_esm @ p["W1e"] + p["b1e"], p["g1e"], p["be1e"]))
    h_esm = ln(h @ p["W2e"] + p["b2e"], p["g2e"], p["be2e"])
    h = gelu(ln(x_val @ p["W1v"] + p["b1v"], p["g1v"], p["be1v"]))
    h_val = ln(h @ p["W2v"] + p["b2v"], p["g2v"], p["be2v"])

    B, L = h_esm.shape
    hd = L // n_heads
    q = (h_esm @ p["Wq_attn"] + p["bq_attn"]).reshape(B, n_heads, 1, hd)
    k = (h_val @ p["Wk_attn"] + p["bk_attn"]).reshape(B, n_heads, 1, hd)
    v = (h_val @ p["Wv_attn"] + p["bv_attn"]).reshape(B, n_heads, 1, hd)
    scores = jnp.einsum("bhqd,bhkd->bhqk", q, k) / jnp.sqrt(hd)
    attn = jnp.einsum("bhqk,bhkd->bhqd", jax.nn.softmax(scores, axis=-1), v).reshape(B, L)
    h_att = ln(attn @ p["Wo_attn"] + p["bo_attn"], p["g_att"], p["be_att"])

    h = gelu(ln(jnp.concatenate([h_esm, h_att], axis=-1) @ p["Wo1"] + p["bo1"],
                p["go1"], p["beo1"]))
    return h @ p["Wo2"] + p["bo2"] + h_esm


if __name__ == "__main__":
    B, ESM_DIM, N_GENES, LATENT, N_HEADS = 16, 64, 32, 32, 4
    # (dropout=0.1, use_cross_attention=True implied; dropout is eval-mode identity)

    key = jax.random.PRNGKey(0)
    kp, kx, kv = jax.random.split(key, 3)
    params = init_params(kp, ESM_DIM, N_GENES, LATENT)
    esm_embeddings = jax.random.normal(kx, (B, ESM_DIM), jnp.float32)
    perturbation_values = jax.random.normal(kv, (B, N_GENES), jnp.float32)

    prepare_params, forward = make_perturbation_encoder(ESM_DIM, N_GENES, LATENT)
    packed = prepare_params(params)            # one-time fold + slab packing (off hot path)

    out = forward(packed, esm_embeddings, perturbation_values)
    out = jax.block_until_ready(out)

    assert out.shape == (B, LATENT) and out.dtype == jnp.float32
    assert bool(jnp.all(jnp.isfinite(out)))

    # correctness vs full (un-folded) multi-head reference; tolerance covers the erf
    # rational approximation and the trace-time Wv@Wo fold rounding.
    ref = _reference_forward(params, esm_embeddings, perturbation_values, N_HEADS)
    assert bool(jnp.allclose(out, ref, atol=2e-3, rtol=2e-3)), float(jnp.abs(out - ref).max())

    print("KERNEL_OK")
</pallas_src>

<mosaic_0001>
module attributes {stable_mosaic.version = 11 : i64} {
  func.func @kernel(%arg0: memref<16x64xf32, #tpu.memory_space<vmem>>, %arg1: memref<16x32xf32, #tpu.memory_space<vmem>>, %arg2: memref<320x64xf32, #tpu.memory_space<vmem>>, %arg3: memref<19x64xf32, #tpu.memory_space<vmem>>, %arg4: memref<16x32xf32, #tpu.memory_space<vmem>>) attributes {dimension_semantics = [], scalar_prefetch = 0 : i64, scratch_operands = 0 : i64, tpu.core_type = #tpu.core_type<tc>} {
    %c0 = arith.constant 0 : index
    %c0_0 = arith.constant 0 : index
    %0 = vector.load %arg0[%c0, %c0_0] : memref<16x64xf32, #tpu.memory_space<vmem>>, vector<16x64xf32>
    %c0_1 = arith.constant 0 : index
    %c0_2 = arith.constant 0 : index
    %1 = vector.load %arg2[%c0_1, %c0_2] : memref<320x64xf32, #tpu.memory_space<vmem>>, vector<64x64xf32>
    %cst = arith.constant dense<0.000000e+00> : vector<16x64xf32>
    %2 = tpu.matmul %0, %1, %cst {dimension_numbers = #tpu.dot_dimension_numbers<[1], [0], [0], [1], [0, 0, 1, 1], [], []>} : vector<16x64xf32>, vector<64x64xf32>, vector<16x64xf32> -> vector<16x64xf32>
    %c0_3 = arith.constant 0 : index
    %c0_4 = arith.constant 0 : index
    %3 = vector.load %arg3[%c0_3, %c0_4] : memref<19x64xf32, #tpu.memory_space<vmem>>, vector<1x64xf32>
    %4 = vector.broadcast %3 : vector<1x64xf32> to vector<16x64xf32>
    %5 = arith.addf %2, %4 : vector<16x64xf32>
    %cst_5 = arith.constant dense<0.000000e+00> : vector<16xf32>
    %6 = vector.multi_reduction <add>, %5, %cst_5 [1] : vector<16x64xf32> to vector<16xf32>
    %7 = vector.shape_cast %6 : vector<16xf32> to vector<16x1xf32>
    %cst_6 = arith.constant 6.400000e+01 : f32
    %8 = vector.broadcast %cst_6 : f32 to vector<16x1xf32>
    %9 = arith.divf %7, %8 : vector<16x1xf32>
    %10 = vector.broadcast %9 : vector<16x1xf32> to vector<16x64xf32>
    %11 = arith.subf %5, %10 : vector<16x64xf32>
    %12 = arith.mulf %11, %11 : vector<16x64xf32>
    %cst_7 = arith.constant dense<0.000000e+00> : vector<16xf32>
    %13 = vector.multi_reduction <add>, %12, %cst_7 [1] : vector<16x64xf32> to vector<16xf32>
    %14 = vector.shape_cast %13 : vector<16xf32> to vector<16x1xf32>
    %cst_8 = arith.constant 6.400000e+01 : f32
    %15 = vector.broadcast %cst_8 : f32 to vector<16x1xf32>
    %16 = arith.divf %14, %15 : vector<16x1xf32>
    %17 = vector.broadcast %9 : vector<16x1xf32> to vector<16x64xf32>
    %18 = arith.subf %5, %17 : vector<16x64xf32>
    %cst_9 = arith.constant 9.99999974E-6 : f32
    %19 = vector.broadcast %cst_9 : f32 to vector<16x1xf32>
    %20 = arith.addf %16, %19 : vector<16x1xf32>
    %21 = math.rsqrt %20 : vector<16x1xf32>
    %22 = vector.broadcast %21 : vector<16x1xf32> to vector<16x64xf32>
    %23 = arith.mulf %18, %22 : vector<16x64xf32>
    %c1 = arith.constant 1 : index
    %c0_10 = arith.constant 0 : index
    %24 = vector.load %arg3[%c1, %c0_10] : memref<19x64xf32, #tpu.memory_space<vmem>>, vector<1x64xf32>
    %25 = vector.broadcast %24 : vector<1x64xf32> to vector<16x64xf32>
    %26 = arith.mulf %23, %25 : vector<16x64xf32>
    %c2 = arith.constant 2 : index
    %c0_11 = arith.constant 0 : index
    %27 = vector.load %arg3[%c2, %c0_11] : memref<19x64xf32, #tpu.memory_space<vmem>>, vector<1x64xf32>
    %28 = vector.broadcast %27 : vector<1x64xf32> to vector<16x64xf32>
    %29 = arith.addf %26, %28 : vector<16x64xf32>
    %cst_12 = arith.constant 5.000000e-01 : f32
    %30 = vector.broadcast %cst_12 : f32 to vector<16x64xf32>
    %31 = arith.mulf %30, %29 : vector<16x64xf32>
    %cst_13 = arith.constant 0.707106769 : f32
    %32 = vector.broadcast %cst_13 : f32 to vector<16x64xf32>
    %33 = arith.mulf %29, %32 : vector<16x64xf32>
    %cst_14 = arith.constant 0.000000e+00 : f32
    %34 = vector.broadcast %cst_14 : f32 to vector<16x64xf32>
    %35 = arith.cmpf oge, %33, %34 : vector<16x64xf32>
    %cst_15 = arith.constant 1.000000e+00 : f32
    %cst_16 = arith.constant -1.000000e+00 : f32
    %36 = vector.broadcast %cst_15 : f32 to vector<16x64xf32>
    %37 = vector.broadcast %cst_16 : f32 to vector<16x64xf32>
    %38 = arith.select %35, %36, %37 : vector<16x64xi1>, vector<16x64xf32>
    %39 = math.absf %33 : vector<16x64xf32>
    %cst_17 = arith.constant 0.327591091 : f32
    %40 = vector.broadcast %cst_17 : f32 to vector<16x64xf32>
    %41 = arith.mulf %40, %39 : vector<16x64xf32>
    %cst_18 = arith.constant 1.000000e+00 : f32
    %42 = vector.broadcast %cst_18 : f32 to vector<16x64xf32>
    %43 = arith.addf %42, %41 : vector<16x64xf32>
    %cst_19 = arith.constant 1.000000e+00 : f32
    %44 = vector.broadcast %cst_19 : f32 to vector<16x64xf32>
    %45 = arith.divf %44, %43 : vector<16x64xf32>
    %cst_20 = arith.constant 1.06140542 : f32
    %46 = vector.broadcast %cst_20 : f32 to vector<16x64xf32>
    %47 = arith.mulf %46, %45 : vector<16x64xf32>
    %cst_21 = arith.constant -1.45315206 : f32
    %48 = vector.broadcast %cst_21 : f32 to vector<16x64xf32>
    %49 = arith.addf %47, %48 : vector<16x64xf32>
    %50 = arith.mulf %49, %45 : vector<16x64xf32>
    %cst_22 = arith.constant 1.42141378 : f32
    %51 = vector.broadcast %cst_22 : f32 to vector<16x64xf32>
    %52 = arith.addf %50, %51 : vector<16x64xf32>
    %53 = arith.mulf %52, %45 : vector<16x64xf32>
    %cst_23 = arith.constant -0.284496725 : f32
    %54 = vector.broadcast %cst_23 : f32 to vector<16x64xf32>
    %55 = arith.addf %53, %54 : vector<16x64xf32>
    %56 = arith.mulf %55, %45 : vector<16x64xf32>
    %cst_24 = arith.constant 0.254829586 : f32
    %57 = vector.broadcast %cst_24 : f32 to vector<16x64xf32>
    %58 = arith.addf %56, %57 : vector<16x64xf32>
    %59 = arith.mulf %58, %45 : vector<16x64xf32>
    %cst_25 = arith.constant 0.000000e+00 : f32
    %60 = vector.broadcast %cst_25 : f32 to vector<16x64xf32>
    %61 = arith.subf %60, %39 : vector<16x64xf32>
    %62 = arith.mulf %61, %39 : vector<16x64xf32>
    %63 = math.exp %62 : vector<16x64xf32>
    %64 = arith.mulf %59, %63 : vector<16x64xf32>
    %cst_26 = arith.constant 1.000000e+00 : f32
    %65 = vector.broadcast %cst_26 : f32 to vector<16x64xf32>
    %66 = arith.subf %65, %64 : vector<16x64xf32>
    %67 = arith.mulf %38, %66 : vector<16x64xf32>
    %cst_27 = arith.constant 1.000000e+00 : f32
    %68 = vector.broadcast %cst_27 : f32 to vector<16x64xf32>
    %69 = arith.addf %68, %67 : vector<16x64xf32>
    %70 = arith.mulf %31, %69 : vector<16x64xf32>
    %c64 = arith.constant 64 : index
    %c0_28 = arith.constant 0 : index
    %71 = vector.load %arg2[%c64, %c0_28] : memref<320x64xf32, #tpu.memory_space<vmem>>, vector<64x32xf32>
    %cst_29 = arith.constant dense<0.000000e+00> : vector<16x32xf32>
    %72 = tpu.matmul %70, %71, %cst_29 {dimension_numbers = #tpu.dot_dimension_numbers<[1], [0], [0], [1], [0, 0, 1, 1], [], []>} : vector<16x64xf32>, vector<64x32xf32>, vector<16x32xf32> -> vector<16x32xf32>
    %c3 = arith.constant 3 : index
    %c0_30 = arith.constant 0 : index
    %73 = vector.load %arg3[%c3, %c0_30] : memref<19x64xf32, #tpu.memory_space<vmem>>, vector<1x32xf32>
    %74 = vector.broadcast %73 : vector<1x32xf32> to vector<16x32xf32>
    %75 = arith.addf %72, %74 : vector<16x32xf32>
    %cst_31 = arith.constant dense<0.000000e+00> : vector<16xf32>
    %76 = vector.multi_reduction <add>, %75, %cst_31 [1] : vector<16x32xf32> to vector<16xf32>
    %77 = vector.shape_cast %76 : vector<16xf32> to vector<16x1xf32>
    %cst_32 = arith.constant 3.200000e+01 : f32
    %78 = vector.broadcast %cst_32 : f32 to vector<16x1xf32>
    %79 = arith.divf %77, %78 : vector<16x1xf32>
    %80 = vector.broadcast %79 : vector<16x1xf32> to vector<16x32xf32>
    %81 = arith.subf %75, %80 : vector<16x32xf32>
    %82 = arith.mulf %81, %81 : vector<16x32xf32>
    %cst_33 = arith.constant dense<0.000000e+00> : vector<16xf32>
    %83 = vector.multi_reduction <add>, %82, %cst_33 [1] : vector<16x32xf32> to vector<16xf32>
    %84 = vector.shape_cast %83 : vector<16xf32> to vector<16x1xf32>
    %cst_34 = arith.constant 3.200000e+01 : f32
    %85 = vector.broadcast %cst_34 : f32 to vector<16x1xf32>
    %86 = arith.divf %84, %85 : vector<16x1xf32>
    %87 = vector.broadcast %79 : vector<16x1xf32> to vector<16x32xf32>
    %88 = arith.subf %75, %87 : vector<16x32xf32>
    %cst_35 = arith.constant 9.99999974E-6 : f32
    %89 = vector.broadcast %cst_35 : f32 to vector<16x1xf32>
    %90 = arith.addf %86, %89 : vector<16x1xf32>
    %91 = math.rsqrt %90 : vector<16x1xf32>
    %92 = vector.broadcast %91 : vector<16x1xf32> to vector<16x32xf32>
    %93 = arith.mulf %88, %92 : vector<16x32xf32>
    %c4 = arith.constant 4 : index
    %c0_36 = arith.constant 0 : index
    %94 = vector.load %arg3[%c4, %c0_36] : memref<19x64xf32, #tpu.memory_space<vmem>>, vector<1x32xf32>
    %95 = vector.broadcast %94 : vector<1x32xf32> to vector<16x32xf32>
    %96 = arith.mulf %93, %95 : vector<16x32xf32>
    %c5 = arith.constant 5 : index
    %c0_37 = arith.constant 0 : index
    %97 = vector.load %arg3[%c5, %c0_37] : memref<19x64xf32, #tpu.memory_space<vmem>>, vector<1x32xf32>
    %98 = vector.broadcast %97 : vector<1x32xf32> to vector<16x32xf32>
    %99 = arith.addf %96, %98 : vector<16x32xf32>
    %c0_38 = arith.constant 0 : index
    %c0_39 = arith.constant 0 : index
    %100 = vector.load %arg1[%c0_38, %c0_39] : memref<16x32xf32, #tpu.memory_space<vmem>>, vector<16x32xf32>
    %c128 = arith.constant 128 : index
    %c0_40 = arith.constant 0 : index
    %101 = vector.load %arg2[%c128, %c0_40] : memref<320x64xf32, #tpu.memory_space<vmem>>, vector<32x32xf32>
    %cst_41 = arith.constant dense<0.000000e+00> : vector<16x32xf32>
    %102 = tpu.matmul %100, %101, %cst_41 {dimension_numbers = #tpu.dot_dimension_numbers<[1], [0], [0], [1], [0, 0, 1, 1], [], []>} : vector<16x32xf32>, vector<32x32xf32>, vector<16x32xf32> -> vector<16x32xf32>
    %c6 = arith.constant 6 : index
    %c0_42 = arith.constant 0 : index
    %103 = vector.load %arg3[%c6, %c0_42] : memref<19x64xf32, #tpu.memory_space<vmem>>, vector<1x32xf32>
    %104 = vector.broadcast %103 : vector<1x32xf32> to vector<16x32xf32>
    %105 = arith.addf %102, %104 : vector<16x32xf32>
    %cst_43 = arith.constant dense<0.000000e+00> : vector<16xf32>
    %106 = vector.multi_reduction <add>, %105, %cst_43 [1] : vector<16x32xf32> to vector<16xf32>
    %107 = vector.shape_cast %106 : vector<16xf32> to vector<16x1xf32>
    %cst_44 = arith.constant 3.200000e+01 : f32
    %108 = vector.broadcast %cst_44 : f32 to vector<16x1xf32>
    %109 = arith.divf %107, %108 : vector<16x1xf32>
    %110 = vector.broadcast %109 : vector<16x1xf32> to vector<16x32xf32>
    %111 = arith.subf %105, %110 : vector<16x32xf32>
    %112 = arith.mulf %111, %111 : vector<16x32xf32>
    %cst_45 = arith.constant dense<0.000000e+00> : vector<16xf32>
    %113 = vector.multi_reduction <add>, %112, %cst_45 [1] : vector<16x32xf32> to vector<16xf32>
    %114 = vector.shape_cast %113 : vector<16xf32> to vector<16x1xf32>
    %cst_46 = arith.constant 3.200000e+01 : f32
    %115 = vector.broadcast %cst_46 : f32 to vector<16x1xf32>
    %116 = arith.divf %114, %115 : vector<16x1xf32>
    %117 = vector.broadcast %109 : vector<16x1xf32> to vector<16x32xf32>
    %118 = arith.subf %105, %117 : vector<16x32xf32>
    %cst_47 = arith.constant 9.99999974E-6 : f32
    %119 = vector.broadcast %cst_47 : f32 to vector<16x1xf32>
    %120 = arith.addf %116, %119 : vector<16x1xf32>
    %121 = math.rsqrt %120 : vector<16x1xf32>
    %122 = vector.broadcast %121 : vector<16x1xf32> to vector<16x32xf32>
    %123 = arith.mulf %118, %122 : vector<16x32xf32>
    %c7 = arith.constant 7 : index
    %c0_48 = arith.constant 0 : index
    %124 = vector.load %arg3[%c7, %c0_48] : memref<19x64xf32, #tpu.memory_space<vmem>>, vector<1x32xf32>
    %125 = vector.broadcast %124 : vector<1x32xf32> to vector<16x32xf32>
    %126 = arith.mulf %123, %125 : vector<16x32xf32>
    %c8 = arith.constant 8 : index
    %c0_49 = arith.constant 0 : index
    %127 = vector.load %arg3[%c8, %c0_49] : memref<19x64xf32, #tpu.memory_space<vmem>>, vector<1x32xf32>
    %128 = vector.broadcast %127 : vector<1x32xf32> to vector<16x32xf32>
    %129 = arith.addf %126, %128 : vector<16x32xf32>
    %cst_50 = arith.constant 5.000000e-01 : f32
    %130 = vector.broadcast %cst_50 : f32 to vector<16x32xf32>
    %131 = arith.mulf %130, %129 : vector<16x32xf32>
    %cst_51 = arith.constant 0.707106769 : f32
    %132 = vector.broadcast %cst_51 : f32 to vector<16x32xf32>
    %133 = arith.mulf %129, %132 : vector<16x32xf32>
    %cst_52 = arith.constant 0.000000e+00 : f32
    %134 = vector.broadcast %cst_52 : f32 to vector<16x32xf32>
    %135 = arith.cmpf oge, %133, %134 : vector<16x32xf32>
    %cst_53 = arith.constant 1.000000e+00 : f32
    %cst_54 = arith.constant -1.000000e+00 : f32
    %136 = vector.broadcast %cst_53 : f32 to vector<16x32xf32>
    %137 = vector.broadcast %cst_54 : f32 to vector<16x32xf32>
    %138 = arith.select %135, %136, %137 : vector<16x32xi1>, vector<16x32xf32>
    %139 = math.absf %133 : vector<16x32xf32>
    %cst_55 = arith.constant 0.327591091 : f32
    %140 = vector.broadcast %cst_55 : f32 to vector<16x32xf32>
    %141 = arith.mulf %140, %139 : vector<16x32xf32>
    %cst_56 = arith.constant 1.000000e+00 : f32
    %142 = vector.broadcast %cst_56 : f32 to vector<16x32xf32>
    %143 = arith.addf %142, %141 : vector<16x32xf32>
    %cst_57 = arith.constant 1.000000e+00 : f32
    %144 = vector.broadcast %cst_57 : f32 to vector<16x32xf32>
    %145 = arith.divf %144, %143 : vector<16x32xf32>
    %cst_58 = arith.constant 1.06140542 : f32
    %146 = vector.broadcast %cst_58 : f32 to vector<16x32xf32>
    %147 = arith.mulf %146, %145 : vector<16x32xf32>
    %cst_59 = arith.constant -1.45315206 : f32
    %148 = vector.broadcast %cst_59 : f32 to vector<16x32xf32>
    %149 = arith.addf %147, %148 : vector<16x32xf32>
    %150 = arith.mulf %149, %145 : vector<16x32xf32>
    %cst_60 = arith.constant 1.42141378 : f32
    %151 = vector.broadcast %cst_60 : f32 to vector<16x32xf32>
    %152 = arith.addf %150, %151 : vector<16x32xf32>
    %153 = arith.mulf %152, %145 : vector<16x32xf32>
    %cst_61 = arith.constant -0.284496725 : f32
    %154 = vector.broadcast %cst_61 : f32 to vector<16x32xf32>
    %155 = arith.addf %153, %154 : vector<16x32xf32>
    %156 = arith.mulf %155, %145 : vector<16x32xf32>
    %cst_62 = arith.constant 0.254829586 : f32
    %157 = vector.broadcast %cst_62 : f32 to vector<16x32xf32>
    %158 = arith.addf %156, %157 : vector<16x32xf32>
    %159 = arith.mulf %158, %145 : vector<16x32xf32>
    %cst_63 = arith.constant 0.000000e+00 : f32
    %160 = vector.broadcast %cst_63 : f32 to vector<16x32xf32>
    %161 = arith.subf %160, %139 : vector<16x32xf32>
    %162 = arith.mulf %161, %139 : vector<16x32xf32>
    %163 = math.exp %162 : vector<16x32xf32>
    %164 = arith.mulf %159, %163 : vector<16x32xf32>
    %cst_64 = arith.constant 1.000000e+00 : f32
    %165 = vector.broadcast %cst_64 : f32 to vector<16x32xf32>
    %166 = arith.subf %165, %164 : vector<16x32xf32>
    %167 = arith.mulf %138, %166 : vector<16x32xf32>
    %cst_65 = arith.constant 1.000000e+00 : f32
    %168 = vector.broadcast %cst_65 : f32 to vector<16x32xf32>
    %169 = arith.addf %168, %167 : vector<16x32xf32>
    %170 = arith.mulf %131, %169 : vector<16x32xf32>
    %c160 = arith.constant 160 : index
    %c0_66 = arith.constant 0 : index
    %171 = vector.load %arg2[%c160, %c0_66] : memref<320x64xf32, #tpu.memory_space<vmem>>, vector<32x32xf32>
    %cst_67 = arith.constant dense<0.000000e+00> : vector<16x32xf32>
    %172 = tpu.matmul %170, %171, %cst_67 {dimension_numbers = #tpu.dot_dimension_numbers<[1], [0], [0], [1], [0, 0, 1, 1], [], []>} : vector<16x32xf32>, vector<32x32xf32>, vector<16x32xf32> -> vector<16x32xf32>
    %c9 = arith.constant 9 : index
    %c0_68 = arith.constant 0 : index
    %173 = vector.load %arg3[%c9, %c0_68] : memref<19x64xf32, #tpu.memory_space<vmem>>, vector<1x32xf32>
    %174 = vector.broadcast %173 : vector<1x32xf32> to vector<16x32xf32>
    %175 = arith.addf %172, %174 : vector<16x32xf32>
    %cst_69 = arith.constant dense<0.000000e+00> : vector<16xf32>
    %176 = vector.multi_reduction <add>, %175, %cst_69 [1] : vector<16x32xf32> to vector<16xf32>
    %177 = vector.shape_cast %176 : vector<16xf32> to vector<16x1xf32>
    %cst_70 = arith.constant 3.200000e+01 : f32
    %178 = vector.broadcast %cst_70 : f32 to vector<16x1xf32>
    %179 = arith.divf %177, %178 : vector<16x1xf32>
    %180 = vector.broadcast %179 : vector<16x1xf32> to vector<16x32xf32>
    %181 = arith.subf %175, %180 : vector<16x32xf32>
    %182 = arith.mulf %181, %181 : vector<16x32xf32>
    %cst_71 = arith.constant dense<0.000000e+00> : vector<16xf32>
    %183 = vector.multi_reduction <add>, %182, %cst_71 [1] : vector<16x32xf32> to vector<16xf32>
    %184 = vector.shape_cast %183 : vector<16xf32> to vector<16x1xf32>
    %cst_72 = arith.constant 3.200000e+01 : f32
    %185 = vector.broadcast %cst_72 : f32 to vector<16x1xf32>
    %186 = arith.divf %184, %185 : vector<16x1xf32>
    %187 = vector.broadcast %179 : vector<16x1xf32> to vector<16x32xf32>
    %188 = arith.subf %175, %187 : vector<16x32xf32>
    %cst_73 = arith.constant 9.99999974E-6 : f32
    %189 = vector.broadcast %cst_73 : f32 to vector<16x1xf32>
    %190 = arith.addf %186, %189 : vector<16x1xf32>
    %191 = math.rsqrt %190 : vector<16x1xf32>
    %192 = vector.broadcast %191 : vector<16x1xf32> to vector<16x32xf32>
    %193 = arith.mulf %188, %192 : vector<16x32xf32>
    %c10 = arith.constant 10 : index
    %c0_74 = arith.constant 0 : index
    %194 = vector.load %arg3[%c10, %c0_74] : memref<19x64xf32, #tpu.memory_space<vmem>>, vector<1x32xf32>
    %195 = vector.broadcast %194 : vector<1x32xf32> to vector<16x32xf32>
    %196 = arith.mulf %193, %195 : vector<16x32xf32>
    %c11 = arith.constant 11 : index
    %c0_75 = arith.constant 0 : index
    %197 = vector.load %arg3[%c11, %c0_75] : memref<19x64xf32, #tpu.memory_space<vmem>>, vector<1x32xf32>
    %198 = vector.broadcast %197 : vector<1x32xf32> to vector<16x32xf32>
    %199 = arith.addf %196, %198 : vector<16x32xf32>
    %c192 = arith.constant 192 : index
    %c0_76 = arith.constant 0 : index
    %200 = vector.load %arg2[%c192, %c0_76] : memref<320x64xf32, #tpu.memory_space<vmem>>, vector<32x32xf32>
    %cst_77 = arith.constant dense<0.000000e+00> : vector<16x32xf32>
    %201 = tpu.matmul %199, %200, %cst_77 {dimension_numbers = #tpu.dot_dimension_numbers<[1], [0], [0], [1], [0, 0, 1, 1], [], []>} : vector<16x32xf32>, vector<32x32xf32>, vector<16x32xf32> -> vector<16x32xf32>
    %c12 = arith.constant 12 : index
    %c0_78 = arith.constant 0 : index
    %202 = vector.load %arg3[%c12, %c0_78] : memref<19x64xf32, #tpu.memory_space<vmem>>, vector<1x32xf32>
    %203 = vector.broadcast %202 : vector<1x32xf32> to vector<16x32xf32>
    %204 = arith.addf %201, %203 : vector<16x32xf32>
    %cst_79 = arith.constant dense<0.000000e+00> : vector<16xf32>
    %205 = vector.multi_reduction <add>, %204, %cst_79 [1] : vector<16x32xf32> to vector<16xf32>
    %206 = vector.shape_cast %205 : vector<16xf32> to vector<16x1xf32>
    %cst_80 = arith.constant 3.200000e+01 : f32
    %207 = vector.broadcast %cst_80 : f32 to vector<16x1xf32>
    %208 = arith.divf %206, %207 : vector<16x1xf32>
    %209 = vector.broadcast %208 : vector<16x1xf32> to vector<16x32xf32>
    %210 = arith.subf %204, %209 : vector<16x32xf32>
    %211 = arith.mulf %210, %210 : vector<16x32xf32>
    %cst_81 = arith.constant dense<0.000000e+00> : vector<16xf32>
    %212 = vector.multi_reduction <add>, %211, %cst_81 [1] : vector<16x32xf32> to vector<16xf32>
    %213 = vector.shape_cast %212 : vector<16xf32> to vector<16x1xf32>
    %cst_82 = arith.constant 3.200000e+01 : f32
    %214 = vector.broadcast %cst_82 : f32 to vector<16x1xf32>
    %215 = arith.divf %213, %214 : vector<16x1xf32>
    %216 = vector.broadcast %208 : vector<16x1xf32> to vector<16x32xf32>
    %217 = arith.subf %204, %216 : vector<16x32xf32>
    %cst_83 = arith.constant 9.99999974E-6 : f32
    %218 = vector.broadcast %cst_83 : f32 to vector<16x1xf32>
    %219 = arith.addf %215, %218 : vector<16x1xf32>
    %220 = math.rsqrt %219 : vector<16x1xf32>
    %221 = vector.broadcast %220 : vector<16x1xf32> to vector<16x32xf32>
    %222 = arith.mulf %217, %221 : vector<16x32xf32>
    %c13 = arith.constant 13 : index
    %c0_84 = arith.constant 0 : index
    %223 = vector.load %arg3[%c13, %c0_84] : memref<19x64xf32, #tpu.memory_space<vmem>>, vector<1x32xf32>
    %224 = vector.broadcast %223 : vector<1x32xf32> to vector<16x32xf32>
    %225 = arith.mulf %222, %224 : vector<16x32xf32>
    %c14 = arith.constant 14 : index
    %c0_85 = arith.constant 0 : index
    %226 = vector.load %arg3[%c14, %c0_85] : memref<19x64xf32, #tpu.memory_space<vmem>>, vector<1x32xf32>
    %227 = vector.broadcast %226 : vector<1x32xf32> to vector<16x32xf32>
    %228 = arith.addf %225, %227 : vector<16x32xf32>
    %229 = tpu.concatenate %99, %228 in 1 : vector<16x32xf32>, vector<16x32xf32> -> vector<16x64xf32>
    %c224 = arith.constant 224 : index
    %c0_86 = arith.constant 0 : index
    %230 = vector.load %arg2[%c224, %c0_86] : memref<320x64xf32, #tpu.memory_space<vmem>>, vector<64x32xf32>
    %cst_87 = arith.constant dense<0.000000e+00> : vector<16x32xf32>
    %231 = tpu.matmul %229, %230, %cst_87 {dimension_numbers = #tpu.dot_dimension_numbers<[1], [0], [0], [1], [0, 0, 1, 1], [], []>} : vector<16x64xf32>, vector<64x32xf32>, vector<16x32xf32> -> vector<16x32xf32>
    %c15 = arith.constant 15 : index
    %c0_88 = arith.constant 0 : index
    %232 = vector.load %arg3[%c15, %c0_88] : memref<19x64xf32, #tpu.memory_space<vmem>>, vector<1x32xf32>
    %233 = vector.broadcast %232 : vector<1x32xf32> to vector<16x32xf32>
    %234 = arith.addf %231, %233 : vector<16x32xf32>
    %cst_89 = arith.constant dense<0.000000e+00> : vector<16xf32>
    %235 = vector.multi_reduction <add>, %234, %cst_89 [1] : vector<16x32xf32> to vector<16xf32>
    %236 = vector.shape_cast %235 : vector<16xf32> to vector<16x1xf32>
    %cst_90 = arith.constant 3.200000e+01 : f32
    %237 = vector.broadcast %cst_90 : f32 to vector<16x1xf32>
    %238 = arith.divf %236, %237 : vector<16x1xf32>
    %239 = vector.broadcast %238 : vector<16x1xf32> to vector<16x32xf32>
    %240 = arith.subf %234, %239 : vector<16x32xf32>
    %241 = arith.mulf %240, %240 : vector<16x32xf32>
    %cst_91 = arith.constant dense<0.000000e+00> : vector<16xf32>
    %242 = vector.multi_reduction <add>, %241, %cst_91 [1] : vector<16x32xf32> to vector<16xf32>
    %243 = vector.shape_cast %242 : vector<16xf32> to vector<16x1xf32>
    %cst_92 = arith.constant 3.200000e+01 : f32
    %244 = vector.broadcast %cst_92 : f32 to vector<16x1xf32>
    %245 = arith.divf %243, %244 : vector<16x1xf32>
    %246 = vector.broadcast %238 : vector<16x1xf32> to vector<16x32xf32>
    %247 = arith.subf %234, %246 : vector<16x32xf32>
    %cst_93 = arith.constant 9.99999974E-6 : f32
    %248 = vector.broadcast %cst_93 : f32 to vector<16x1xf32>
    %249 = arith.addf %245, %248 : vector<16x1xf32>
    %250 = math.rsqrt %249 : vector<16x1xf32>
    %251 = vector.broadcast %250 : vector<16x1xf32> to vector<16x32xf32>
    %252 = arith.mulf %247, %251 : vector<16x32xf32>
    %c16 = arith.constant 16 : index
    %c0_94 = arith.constant 0 : index
    %253 = vector.load %arg3[%c16, %c0_94] : memref<19x64xf32, #tpu.memory_space<vmem>>, vector<1x32xf32>
    %254 = vector.broadcast %253 : vector<1x32xf32> to vector<16x32xf32>
    %255 = arith.mulf %252, %254 : vector<16x32xf32>
    %c17 = arith.constant 17 : index
    %c0_95 = arith.constant 0 : index
    %256 = vector.load %arg3[%c17, %c0_95] : memref<19x64xf32, #tpu.memory_space<vmem>>, vector<1x32xf32>
    %257 = vector.broadcast %256 : vector<1x32xf32> to vector<16x32xf32>
    %258 = arith.addf %255, %257 : vector<16x32xf32>
    %cst_96 = arith.constant 5.000000e-01 : f32
    %259 = vector.broadcast %cst_96 : f32 to vector<16x32xf32>
    %260 = arith.mulf %259, %258 : vector<16x32xf32>
    %cst_97 = arith.constant 0.707106769 : f32
    %261 = vector.broadcast %cst_97 : f32 to vector<16x32xf32>
    %262 = arith.mulf %258, %261 : vector<16x32xf32>
    %cst_98 = arith.constant 0.000000e+00 : f32
    %263 = vector.broadcast %cst_98 : f32 to vector<16x32xf32>
    %264 = arith.cmpf oge, %262, %263 : vector<16x32xf32>
    %cst_99 = arith.constant 1.000000e+00 : f32
    %cst_100 = arith.constant -1.000000e+00 : f32
    %265 = vector.broadcast %cst_99 : f32 to vector<16x32xf32>
    %266 = vector.broadcast %cst_100 : f32 to vector<16x32xf32>
    %267 = arith.select %264, %265, %266 : vector<16x32xi1>, vector<16x32xf32>
    %268 = math.absf %262 : vector<16x32xf32>
    %cst_101 = arith.constant 0.327591091 : f32
    %269 = vector.broadcast %cst_101 : f32 to vector<16x32xf32>
    %270 = arith.mulf %269, %268 : vector<16x32xf32>
    %cst_102 = arith.constant 1.000000e+00 : f32
    %271 = vector.broadcast %cst_102 : f32 to vector<16x32xf32>
    %272 = arith.addf %271, %270 : vector<16x32xf32>
    %cst_103 = arith.constant 1.000000e+00 : f32
    %273 = vector.broadcast %cst_103 : f32 to vector<16x32xf32>
    %274 = arith.divf %273, %272 : vector<16x32xf32>
    %cst_104 = arith.constant 1.06140542 : f32
    %275 = vector.broadcast %cst_104 : f32 to vector<16x32xf32>
    %276 = arith.mulf %275, %274 : vector<16x32xf32>
    %cst_105 = arith.constant -1.45315206 : f32
    %277 = vector.broadcast %cst_105 : f32 to vector<16x32xf32>
    %278 = arith.addf %276, %277 : vector<16x32xf32>
    %279 = arith.mulf %278, %274 : vector<16x32xf32>
    %cst_106 = arith.constant 1.42141378 : f32
    %280 = vector.broadcast %cst_106 : f32 to vector<16x32xf32>
    %281 = arith.addf %279, %280 : vector<16x32xf32>
    %282 = arith.mulf %281, %274 : vector<16x32xf32>
    %cst_107 = arith.constant -0.284496725 : f32
    %283 = vector.broadcast %cst_107 : f32 to vector<16x32xf32>
    %284 = arith.addf %282, %283 : vector<16x32xf32>
    %285 = arith.mulf %284, %274 : vector<16x32xf32>
    %cst_108 = arith.constant 0.254829586 : f32
    %286 = vector.broadcast %cst_108 : f32 to vector<16x32xf32>
    %287 = arith.addf %285, %286 : vector<16x32xf32>
    %288 = arith.mulf %287, %274 : vector<16x32xf32>
    %cst_109 = arith.constant 0.000000e+00 : f32
    %289 = vector.broadcast %cst_109 : f32 to vector<16x32xf32>
    %290 = arith.subf %289, %268 : vector<16x32xf32>
    %291 = arith.mulf %290, %268 : vector<16x32xf32>
    %292 = math.exp %291 : vector<16x32xf32>
    %293 = arith.mulf %288, %292 : vector<16x32xf32>
    %cst_110 = arith.constant 1.000000e+00 : f32
    %294 = vector.broadcast %cst_110 : f32 to vector<16x32xf32>
    %295 = arith.subf %294, %293 : vector<16x32xf32>
    %296 = arith.mulf %267, %295 : vector<16x32xf32>
    %cst_111 = arith.constant 1.000000e+00 : f32
    %297 = vector.broadcast %cst_111 : f32 to vector<16x32xf32>
    %298 = arith.addf %297, %296 : vector<16x32xf32>
    %299 = arith.mulf %260, %298 : vector<16x32xf32>
    %c288 = arith.constant 288 : index
    %c0_112 = arith.constant 0 : index
    %300 = vector.load %arg2[%c288, %c0_112] : memref<320x64xf32, #tpu.memory_space<vmem>>, vector<32x32xf32>
    %cst_113 = arith.constant dense<0.000000e+00> : vector<16x32xf32>
    %301 = tpu.matmul %299, %300, %cst_113 {dimension_numbers = #tpu.dot_dimension_numbers<[1], [0], [0], [1], [0, 0, 1, 1], [], []>} : vector<16x32xf32>, vector<32x32xf32>, vector<16x32xf32> -> vector<16x32xf32>
    %c18 = arith.constant 18 : index
    %c0_114 = arith.constant 0 : index
    %302 = vector.load %arg3[%c18, %c0_114] : memref<19x64xf32, #tpu.memory_space<vmem>>, vector<1x32xf32>
    %303 = vector.broadcast %302 : vector<1x32xf32> to vector<16x32xf32>
    %304 = arith.addf %301, %303 : vector<16x32xf32>
    %305 = arith.addf %304, %99 : vector<16x32xf32>
    %c0_115 = arith.constant 0 : index
    %c0_116 = arith.constant 0 : index
    %306 = vector.load %arg4[%c0_115, %c0_116] : memref<16x32xf32, #tpu.memory_space<vmem>>, vector<16x32xf32>
    tpu.vector_store %arg4[%c0_115, %c0_116], %305 {strides = array<i32>} : memref<16x32xf32, #tpu.memory_space<vmem>>, vector<16x32xf32>,
    return
  }
}

</mosaic_0001>

<bundles_post_ra>
// kernel: forward.1
= control target key start
LH: loop header
LB: loop body
LE: loop exit
PB: predicated region body
PF: predicated region fallthrough
CT: control target
= control target key end

     0   :  { %vm33_vm0 = vcmask 523264   ;;  %s1793_s0 = inlined_call_operand.vmem [shape: f32[16,64], index: 0, kind: input, shape index: {}]   ;;  %s1794_s1 = inlined_call_operand.vmem [shape: f32[16,32], index: 1, kind: input, shape index: {}]   ;;  %s1795_s2 = inlined_call_operand.vmem [shape: f32[320,64], index: 2, kind: input, shape index: {}]   ;;  %s1796_s3 = inlined_call_operand.vmem [shape: f32[19,64], index: 3, kind: input, shape index: {}]   ;;  %s1797_s4 = inlined_call_operand.hbm [shape: f32[16,32], index: 4, kind: output, shape index: {}]  }
   0x1   :  { %v20_v0 = vld [vmem:[%s1795_s2] sm:$0xff]  ;;  %v21_v1 = vld [vmem:[%s1795_s2 + $0x8] sm:$0xff]  ;;  %v22_v2 = vld [vmem:[%s1795_s2 + $0x10] sm:$0xff] }
   0x2   :  { %v1288_v3 = vpack.c.bf16 %v21_v1, %v20_v0  ;;  %v23_v4 = vld [vmem:[%s1795_s2 + $0x18] sm:$0xff]  ;;  %v24_v6 = vld [vmem:[%s1795_s2 + $0x20] sm:$0xff]  ;;  %v25_v7 = vld [vmem:[%s1795_s2 + $0x28] sm:$0xff] }
   0x3   :  { %v1292_v5 = vpack.c.bf16 %v23_v4, %v22_v2  ;;  %v18_v8 = vld [vmem:[%s1793_s0] sm:$0xff]  ;;  %v1296_v9 = vpack.c.bf16 %v25_v7, %v24_v6 }
   0x4   :  { %1289 = vmatprep.subr.bf16.mxu0 %v1288_v3  ;;  %1203 = vmatprep.mubr.msk.f32.mxu0 %vm33_vm0, %v18_v8 }
   0x5   :  { %1291 = vmatpush3.bf16.msra.mxu0 %v1288_v3 }
   0x6   :  { %1293 = vmatprep.subr.bf16.mxu0 %v1292_v5 }
   0x7   :  { %9 = vsyncpa [#allocation3], 0  ;;  %v26_v10 = vld [vmem:[%s1795_s2 + $0x30] sm:$0xff]  ;;  %v27_v11 = vld [vmem:[%s1795_s2 + $0x38] sm:$0xff]  ;;  %vm304_vm1 = vcmask 261120   ;;  %s1446_s11 = smov 32  }
   0x8   :  { %v1300_v12 = vpack.c.bf16 %v27_v11, %v26_v10  ;;  %v348_v13 = vld [vmem:[%s1795_s2 + $0x80] sm:$0xff]  ;;  %v349_v14 = vld [vmem:[%s1795_s2 + $0x88] sm:$0xff]  ;;  %v350_v16 = vld [vmem:[%s1795_s2 + $0x90] sm:$0xff]  ;;  %s1447_s29 = smov [#allocation2]  }
   0x9   :  { %1295 = vmatpush3.bf16.msra.mxu0 %v1292_v5  ;;  %v1320_v15 = vpack.c.bf16 %v349_v14, %v348_v13  ;;  %v351_v17 = vld [vmem:[%s1795_s2 + $0x98] sm:$0xff]  ;;  %v19_v18 = vld [vmem:[%s1793_s0 + $0x8] sm:$0xff]  ;;  %v346_v20 = vld [vmem:[%s1794_s1] sm:$0xff]  ;;  %s1089_s30 = sshll.u32 %s1447_s29, 4  ;;  %s1090_s30 = int_to_ptr.vmem [resolvable:$true] %s1089_s30 }
   0xa   :  { %1297 = vmatprep.subr.bf16.mxu0 %v1296_v9  ;;  %v1324_v19 = vpack.c.bf16 %v351_v17, %v350_v16  ;;  %v347_v21 = vld [vmem:[%s1794_s1 + $0x8] sm:$0xff]  ;;  %v1100_v22 = vld [vmem:[%s1796_s3] ss:$0 sm:$0xff]  ;;  %v1110_v28 = vld [vmem:[%s1796_s3 + $0x6] ss:$0 sm:$0xff]  ;;  %s1421_s5 = scalar_lea.vmem %s1090_s30, 256  ;;  %p1426_p1 = scmp.lt.s32.totalorder %s1090_s30, %s1090_s30 }
   0xb   :  { %v210_v56 = vld [vmem:[%s1795_s2 + $0x40] sm:$0xff]  ;;  %v211_v57 = vld [vmem:[%s1795_s2 + $0x48] sm:$0xff]  ;;  %v212_v58 = vld [vmem:[%s1795_s2 + $0x50] sm:$0xff]  ;;  %p1422_p0 = scmp.ne.s32.totalorder %s1090_s30, %s1421_s5  ;;  %p1427_p2 = scmp.lt.s32.totalorder %s1421_s5, %s1421_s5 }
   0xc   :  { %v1304_v59 = vpack.c.bf16 %v211_v57, %v210_v56  ;;  %v213_v60 = vld [vmem:[%s1795_s2 + $0x58] sm:$0xff]  ;;  %v214_v62 = vld [vmem:[%s1795_s2 + $0x60] sm:$0xff]  ;;  %v215_v63 = vld [vmem:[%s1795_s2 + $0x68] sm:$0xff] }
   0xd   :  { %1299 = vmatpush3.bf16.msra.mxu0 %v1296_v9  ;;  %v1308_v61 = vpack.c.bf16 %v213_v60, %v212_v58  ;;  %v1312_v0 = vpack.c.bf16 %v215_v63, %v214_v62  ;;  %v216_v1 = vld [vmem:[%s1795_s2 + $0x70] sm:$0xff]  ;;  %v217_v2 = vld [vmem:[%s1795_s2 + $0x78] sm:$0xff]  ;;  %v532_v4 = vld [vmem:[%s1795_s2 + $0xa0] sm:$0xff]  ;;  %p1428_p3 = por %p1427_p2, %p1426_p1 }
   0xe   :  { %1301 = vmatprep.subr.bf16.mxu0 %v1300_v12  ;;  %1305 = vmatprep.subr.bf16.mxu1 %v1304_v59  ;;  %v1316_v3 = vpack.c.bf16 %v217_v2, %v216_v1  ;;  %v533_v5 = vld [vmem:[%s1795_s2 + $0xa8] sm:$0xff] }
   0xf   :  { %1307 = vmatpush3.bf16.msra.mxu1 %v1304_v59  ;;  %v1587_v6 = vpack.c.bf16 %v533_v5, %v532_v4  ;;  %p1429_p4 = pnand %p1428_p3, %p1422_p0 }
  0x10   :  { %1309 = vmatprep.subr.bf16.mxu1 %v1308_v61 }
  0x11   :  { %1303 = vmatpush3.bf16.msra.mxu0 %v1300_v12 }
  0x12   :  { %1321 = vmatprep.subr.bf16.mxu0 %v1320_v15 }
  0x13   :  { %1311 = vmatpush3.bf16.msra.mxu1 %v1308_v61 }
  0x14   :  { %1204 = vmatmul.mubr.msk.f32.vlgmr.msra.gmra.mrb[0].mxu0 %vm33_vm0, %v19_v18  ;;  %1313 = vmatprep.subr.bf16.mxu1 %v1312_v0 }
  0x15   :  { %1323 = vmatpush3.bf16.msra.mxu0 %v1320_v15  ;;  %1233 = vmatprep.mubr.msk.f32.mxu0 %vm304_vm1, %v346_v20  ;;  %v1103_v20 = vld [vmem:[%s1796_s3 + $0x1] ss:$0 sm:$0xff] }
  0x16   :  { %1325 = vmatprep.subr.bf16.mxu0 %v1324_v19 }
  0x17   :  { %1315 = vmatpush3.bf16.msra.mxu1 %v1312_v0 }
  0x18   :  { %1317 = vmatprep.subr.bf16.mxu1 %v1316_v3 }
  0x19   :  { %1327 = vmatpush3.bf16.msra.mxu0 %v1324_v19 }
  0x1b   :  { %1319 = vmatpush3.bf16.msra.mxu1 %v1316_v3 }
  0x1c   :  { %1234 = vmatmul.mubr.msk.f32.vlgmr.msra.gmra.mrb[2].mxu0 %vm304_vm1, %v347_v21  ;;  %1329 = vmatprep.subr.bf16.mxu1 %v1587_v6 }
  0xe7   :  { %v1205_v23 = vpop.f32.mrb[0].mxu0 }
  0xe8   :  { %v106_v24 = vpop.f32.mrb[1].mxu0  ;;  %v112_v26 = vadd.f32 %v1205_v23, %v1100_v22 }
  0xe9   :  { %v107_v25 = vadd.f32 %v1100_v22, %v106_v24  ;;  %v1104_v22 = vld [vmem:[%s1796_s3 + $0x2] ss:$0 sm:$0xff] }
  0xea   :  { %v118_v30 = vsel %vm33_vm0, %v112_v26, 0.0 }
  0xeb   :  { %v115_v27 = vsel %vm33_vm0, %v107_v25, 0.0 }
  0xec   :  { %116 = vadd.xlane.f32.xlu0 %v115_v27 }
  0xef   :  { %v1235_v29 = vpop.f32.mrb[2].mxu0 }
  0xf0   :  { %v429_v31 = vpop.f32.mrb[3].mxu0  ;;  %119 = vadd.xlane.f32.xlu0 %v118_v30  ;;  %v435_v33 = vadd.f32 %v1235_v29, %v1110_v28 }
  0xf1   :  { %v430_v32 = vadd.f32 %v1110_v28, %v429_v31  ;;  %v1113_v31 = vld [vmem:[%s1796_s3 + $0x7] ss:$0 sm:$0xff] }
  0xf2   :  { %v441_v35 = vsel %vm304_vm1, %v435_v33, 0.0 }
  0xf3   :  { %v438_v34 = vsel %vm304_vm1, %v430_v32, 0.0 }
  0xf4   :  { %439 = vadd.xlane.f32.xlu1 %v438_v34 }
  0xf8   :  { %442 = vadd.xlane.f32.xlu1 %v441_v35 }
 0x179   :  { %v117_v36 = vpop.xlane.xlu0 %116 }
 0x17a   :  { %v122_v37 = vmul.f32 0.015625, %v117_v36  ;;  %v1114_v36 = vld [vmem:[%s1796_s3 + $0x8] ss:$0 sm:$0xff] }
 0x17c   :  { %v1537_v38 = vsub.f32 %v107_v25, %v122_v37 }
 0x17d   :  { %v120_v39 = vpop.xlane.xlu0 %119 }
 0x17e   :  { %v123_v40 = vmul.f32 0.015625, %v120_v39  ;;  %v126_v41 = vmul.f32 %v1537_v38, %v1537_v38 }
 0x180   :  { %v1541_v42 = vsub.f32 %v112_v26, %v123_v40  ;;  %v128_v43 = vsel %vm33_vm0, %v126_v41, 0.0 }
 0x181   :  { %v440_v44 = vpop.xlane.xlu1 %439  ;;  %129 = vadd.xlane.f32.xlu0 %v128_v43 }
 0x182   :  { %v444_v45 = vmul.f32 0.03125, %v440_v44  ;;  %v127_v46 = vmul.f32 %v1541_v42, %v1541_v42 }
 0x184   :  { %v1546_v47 = vsub.f32 %v430_v32, %v444_v45  ;;  %v131_v48 = vsel %vm33_vm0, %v127_v46, 0.0 }
 0x185   :  { %v443_v49 = vpop.xlane.xlu1 %442  ;;  %132 = vadd.xlane.f32.xlu1 %v131_v48 }
 0x186   :  { %v445_v50 = vmul.f32 0.03125, %v443_v49  ;;  %v448_v51 = vmul.f32 %v1546_v47, %v1546_v47 }
 0x188   :  { %v1551_v52 = vsub.f32 %v435_v33, %v445_v50  ;;  %v450_v53 = vsel %vm304_vm1, %v448_v51, 0.0 }
 0x189   :  { %451 = vadd.xlane.f32.xlu0 %v450_v53 }
 0x18a   :  { %v449_v54 = vmul.f32 %v1551_v52, %v1551_v52 }
 0x18c   :  { %v453_v55 = vsel %vm304_vm1, %v449_v54, 0.0 }
 0x18d   :  { %454 = vadd.xlane.f32.xlu1 %v453_v55 }
 0x20e   :  { %v130_v7 = vpop.xlane.xlu0 %129 }
 0x20f   :  { %v134_v8 = vmul.f32 0.015625, %v130_v7 }
 0x211   :  { %v136_v9 = vadd.f32 1e-05, %v134_v8 }
 0x212   :  { %v133_v10 = vpop.xlane.xlu1 %132 }
 0x213   :  { %1373 = vrsqrt.f32 %v136_v9  ;;  %v135_v11 = vmul.f32 0.015625, %v133_v10 }
 0x215   :  { %v137_v12 = vadd.f32 1e-05, %v135_v11 }
 0x216   :  { %v452_v13 = vpop.xlane.xlu0 %451 }
 0x217   :  { %1375 = vrsqrt.f32 %v137_v12  ;;  %v456_v14 = vmul.f32 0.03125, %v452_v13 }
 0x219   :  { %v458_v15 = vadd.f32 1e-05, %v456_v14 }
 0x21a   :  { %v455_v16 = vpop.xlane.xlu1 %454 }
 0x21b   :  { %1377 = vrsqrt.f32 %v458_v15  ;;  %v457_v17 = vmul.f32 0.03125, %v455_v16 }
 0x21d   :  { %v1374_v18 = vpop.eup %1373  ;;  %v459_v19 = vadd.f32 1e-05, %v457_v17 }
 0x21e   :  { %v140_v21 = vmul.f32 %v1374_v18, %v1537_v38 }
 0x21f   :  { %1379 = vrsqrt.f32 %v459_v19 }
 0x220   :  { %v147_v23 = vmul.f32 %v1103_v20, %v140_v21 }
 0x221   :  { %v1376_v24 = vpop.eup %1375 }
 0x222   :  { %v141_v25 = vmul.f32 %v1376_v24, %v1541_v42  ;;  %v1598_v26 = vadd.f32 %v1104_v22, %v147_v23 }
 0x224   :  { %v148_v27 = vmul.f32 %v1103_v20, %v141_v25  ;;  %v1601_v28 = vmul.f32 0.70710677, %v1598_v26 }
 0x225   :  { %v1378_v29 = vpop.eup %1377 }
 0x226   :  { %v462_v30 = vmul.f32 %v1378_v29, %v1546_v47  ;;  %v1607_v32 = vadd.f32 %v1104_v22, %v148_v27  ;;  %v164_v33 = vand.u32 2147483647, %v1601_v28  ;;  %vm160_vm2 = vcmp.ge.f32.partialorder %v1601_v28, 0.0 }
 0x227   :  { %v156_v28 = vmul.f32 0.5, %v1598_v26 }
 0x228   :  { %v1611_v34 = vmul.f32 0.70710677, %v1607_v32  ;;  %v166_v35 = vmul.f32 0.3275911, %v164_v33  ;;  %v469_v38 = vmul.f32 %v1113_v31, %v462_v30  ;;  %v192_v51 = vsub.f32 0.0, %v164_v33 }
 0x229   :  { %v1380_v37 = vpop.eup %1379 }
 0x22a   :  { %v463_v39 = vmul.f32 %v1380_v37, %v1551_v52  ;;  %v165_v40 = vand.u32 2147483647, %v1611_v34  ;;  %v168_v41 = vadd.f32 1.0, %v166_v35  ;;  %v1618_v42 = vadd.f32 %v1114_v36, %v469_v38 }
 0x22b   :  { %v194_v57 = vmul.f32 %v192_v51, %v164_v33  ;;  %vm161_vm3 = vcmp.ge.f32.partialorder %v1611_v34, 0.0  ;;  %v535_v34 = vld [vmem:[%s1795_s2 + $0xb8] sm:$0xff] }
 0x22c   :  { %v470_v43 = vmul.f32 %v1113_v31, %v463_v39  ;;  %v167_v44 = vmul.f32 0.3275911, %v165_v40  ;;  %1381 = vrcp.f32 %v168_v41  ;;  %v1621_v45 = vmul.f32 0.70710677, %v1618_v42 }
 0x22d   :  { %v193_v56 = vsub.f32 0.0, %v165_v40  ;;  %v196_v63 = vmul.f32 1.442695, %v194_v57 }
 0x22e   :  { %v169_v46 = vadd.f32 1.0, %v167_v44  ;;  %v1623_v47 = vadd.f32 %v1114_v36, %v470_v43  ;;  %v486_v48 = vand.u32 2147483647, %v1621_v45  ;;  %vm482_vm4 = vcmp.ge.f32.partialorder %v1621_v45, 0.0 }
 0x22f   :  { %v195_v62 = vmul.f32 %v193_v56, %v165_v40 }
 0x230   :  { %1383 = vrcp.f32 %v169_v46  ;;  %v1627_v49 = vmul.f32 0.70710677, %v1623_v47  ;;  %v488_v50 = vmul.f32 0.3275911, %v486_v48  ;;  %v514_v2 = vsub.f32 0.0, %v486_v48 }
 0x231   :  { %v198_v5 = vmul.f32 1.442695, %v195_v62 }
 0x232   :  { %v487_v52 = vand.u32 2147483647, %v1627_v49  ;;  %v490_v53 = vadd.f32 1.0, %v488_v50  ;;  %v516_v11 = vmul.f32 %v514_v2, %v486_v48  ;;  %v1445_v48 = vmov -1.0  }
 0x233   :  { %v162_v50 = vsel %vm160_vm2, 1.0, %v1445_v48  ;;  %v157_v2 = vmul.f32 0.5, %v1607_v32  ;;  %vm483_vm5 = vcmp.ge.f32.partialorder %v1627_v49, 0.0 }
 0x234   :  { %v489_v54 = vmul.f32 0.3275911, %v487_v52  ;;  %1385 = vrcp.f32 %v490_v53  ;;  %v515_v7 = vsub.f32 0.0, %v487_v52  ;;  %v518_v20 = vmul.f32 1.442695, %v516_v11 }
 0x236   :  { %v1382_v55 = vpop.eup %1381  ;;  %v491_v58 = vadd.f32 1.0, %v489_v54  ;;  %v517_v17 = vmul.f32 %v515_v7, %v487_v52 }
 0x237   :  { %v174_v59 = vmul.f32 1.0614054, %v1382_v55 }
 0x238   :  { %1387 = vrcp.f32 %v491_v58  ;;  %v520_v29 = vmul.f32 1.442695, %v517_v17  ;;  %v479_v17 = vmul.f32 0.5, %v1623_v47 }
 0x239   :  { %v176_v60 = vadd.f32 -1.4531521, %v174_v59  ;;  %1389 = vpow2.f32 %v196_v63  ;;  %v163_v59 = vsel %vm161_vm3, 1.0, %v1445_v48 }
 0x23a   :  { %v1384_v61 = vpop.eup %1383  ;;  %1391 = vpow2.f32 %v198_v5 }
 0x23b   :  { %v178_v0 = vmul.f32 %v1382_v55, %v176_v60  ;;  %v175_v1 = vmul.f32 1.0614054, %v1384_v61  ;;  %1393 = vpow2.f32 %v518_v20 }
 0x23c   :  { %1395 = vpow2.f32 %v520_v29 }
 0x23d   :  { %v180_v3 = vadd.f32 1.4214138, %v178_v0  ;;  %v177_v4 = vadd.f32 -1.4531521, %v175_v1  ;;  %v534_v0 = vld [vmem:[%s1795_s2 + $0xb0] sm:$0xff] }
 0x23e   :  { %v1386_v8 = vpop.eup %1385  ;;  %v1332_v7 = vpack.c.bf16 %v535_v34, %v534_v0  ;;  %v1120_v34 = vld [vmem:[%s1796_s3 + $0xc] ss:$0 sm:$0xff] }
 0x23f   :  { %v182_v9 = vmul.f32 %v1382_v55, %v180_v3  ;;  %v179_v10 = vmul.f32 %v1384_v61, %v177_v4  ;;  %v496_v12 = vmul.f32 1.0614054, %v1386_v8 }
 0x241   :  { %v184_v13 = vadd.f32 -0.28449672, %v182_v9  ;;  %v181_v14 = vadd.f32 1.4214138, %v179_v10  ;;  %v498_v16 = vadd.f32 -1.4531521, %v496_v12 }
 0x242   :  { %v1388_v15 = vpop.eup %1387  ;;  %v484_v10 = vsel %vm482_vm4, 1.0, %v1445_v48 }
 0x243   :  { %v186_v18 = vmul.f32 %v1382_v55, %v184_v13  ;;  %v183_v19 = vmul.f32 %v1384_v61, %v181_v14  ;;  %v497_v21 = vmul.f32 1.0614054, %v1388_v15  ;;  %v500_v22 = vmul.f32 %v1386_v8, %v498_v16  ;;  %v1390_v35 = vpop.eup %1389 }
 0x244   :  { %v1392_v46 = vpop.eup %1391  ;;  %v478_v13 = vmul.f32 0.5, %v1618_v42  ;;  %v485_v14 = vsel %vm483_vm5, 1.0, %v1445_v48 }
 0x245   :  { %v188_v23 = vadd.f32 0.2548296, %v186_v18  ;;  %v185_v24 = vadd.f32 -0.28449672, %v183_v19  ;;  %v499_v25 = vadd.f32 -1.4531521, %v497_v21 }
 0x246   :  { %v502_v27 = vadd.f32 1.4214138, %v500_v22 }
 0x247   :  { %v190_v30 = vmul.f32 %v1382_v55, %v188_v23  ;;  %v187_v31 = vmul.f32 %v1384_v61, %v185_v24  ;;  %v501_v33 = vmul.f32 %v1388_v15, %v499_v25 }
 0x248   :  { %v504_v36 = vmul.f32 %v1386_v8, %v502_v27 }
 0x249   :  { %v200_v37 = vmul.f32 %v1390_v35, %v190_v30  ;;  %v189_v38 = vadd.f32 0.2548296, %v187_v31  ;;  %v503_v39 = vadd.f32 1.4214138, %v501_v33 }
 0x24a   :  { %v506_v40 = vadd.f32 -0.28449672, %v504_v36 }
 0x24b   :  { %v202_v41 = vsub.f32 1.0, %v200_v37  ;;  %v191_v43 = vmul.f32 %v1384_v61, %v189_v38  ;;  %v505_v44 = vmul.f32 %v1388_v15, %v503_v39  ;;  %v1394_v61 = vpop.eup %1393  ;;  %v662_v39 = vld [vmem:[%s1795_s2 + $0xc0] sm:$0xff] }
 0x24c   :  { %v508_v51 = vmul.f32 %v1386_v8, %v506_v40  ;;  %v1396_v5 = vpop.eup %1395  ;;  %v663_v40 = vld [vmem:[%s1795_s2 + $0xc8] sm:$0xff] }
 0x24d   :  { %v204_v52 = vmul.f32 %v202_v41, %v162_v50  ;;  %v201_v53 = vmul.f32 %v1392_v46, %v191_v43  ;;  %v507_v54 = vadd.f32 -0.28449672, %v505_v44  ;;  %v1336_v41 = vpack.c.bf16 %v663_v40, %v662_v39  ;;  %v664_v43 = vld [vmem:[%s1795_s2 + $0xd0] sm:$0xff]  ;;  %v665_v44 = vld [vmem:[%s1795_s2 + $0xd8] sm:$0xff] }
 0x24e   :  { %v510_v55 = vadd.f32 0.2548296, %v508_v51  ;;  %v1340_v46 = vpack.c.bf16 %v665_v44, %v664_v43  ;;  %v808_v39 = vld [vmem:[%s1795_s2 + $0x110] sm:$0xff]  ;;  %v809_v40 = vld [vmem:[%s1795_s2 + $0x118] sm:$0xff] }
 0x24f   :  { %v206_v56 = vadd.f32 1.0, %v204_v52  ;;  %v203_v57 = vsub.f32 1.0, %v201_v53  ;;  %v509_v58 = vmul.f32 %v1388_v15, %v507_v54  ;;  %1337 = vmatprep.subr.bf16.mxu0 %v1336_v41 }
 0x250   :  { %v512_v60 = vmul.f32 %v1386_v8, %v510_v55  ;;  %1339 = vmatpush3.bf16.msra.mxu0 %v1336_v41  ;;  %v1356_v41 = vpack.c.bf16 %v809_v40, %v808_v39 }
 0x251   :  { %v208_v62 = vmul.f32 %v206_v56, %v156_v28  ;;  %v205_v63 = vmul.f32 %v203_v57, %v163_v59  ;;  %v511_v1 = vadd.f32 0.2548296, %v509_v58  ;;  %1341 = vmatprep.subr.bf16.mxu0 %v1340_v46  ;;  %v1118_v56 = vld [vmem:[%s1796_s3 + $0xa] ss:$0 sm:$0xff] }
 0x252   :  { %v522_v26 = vmul.f32 %v1394_v61, %v512_v60  ;;  %v1119_v61 = vld [vmem:[%s1796_s3 + $0xb] ss:$0 sm:$0xff] }
 0x253   :  { %1222 = vmatprep.mubr.msk.f32.mxu1 %vm33_vm0, %v208_v62  ;;  %v207_v3 = vadd.f32 1.0, %v205_v63  ;;  %v513_v4 = vmul.f32 %v1388_v15, %v511_v1  ;;  %v1105_v1 = vld [vmem:[%s1796_s3 + $0x3] ss:$0 sm:$0xff] }
 0x254   :  { %v524_v8 = vsub.f32 1.0, %v522_v26  ;;  %1343 = vmatpush3.bf16.msra.mxu0 %v1340_v46 }
 0x255   :  { %v209_v9 = vmul.f32 %v207_v3, %v157_v2  ;;  %v523_v11 = vmul.f32 %v1396_v5, %v513_v4 }
 0x256   :  { %v526_v12 = vmul.f32 %v524_v8, %v484_v10 }
 0x257   :  { %1223 = vmatmul.mubr.msk.f32.vlgmr.msra.gmra.mrb[0].mxu1 %vm33_vm0, %v209_v9  ;;  %v525_v45 = vsub.f32 1.0, %v523_v11 }
 0x258   :  { %1331 = vmatpush3.bf16.msra.mxu1 %v1587_v6  ;;  %v528_v32 = vadd.f32 1.0, %v526_v12  ;;  %v1115_v6 = vld [vmem:[%s1796_s3 + $0x9] ss:$0 sm:$0xff] }
 0x259   :  { %1333 = vmatprep.subr.bf16.mxu1 %v1332_v7  ;;  %v527_v15 = vmul.f32 %v525_v45, %v485_v14 }
 0x25a   :  { %v530_v16 = vmul.f32 %v528_v32, %v478_v13 }
 0x25b   :  { %v529_v18 = vadd.f32 1.0, %v527_v15 }
 0x25c   :  { %1244 = vmatprep.mubr.msk.f32.mxu1 %vm304_vm1, %v530_v16  ;;  %1335 = vmatpush3.bf16.msra.mxu1 %v1332_v7 }
 0x25d   :  { %v531_v49 = vmul.f32 %v529_v18, %v479_v17 }
 0x25f   :  { %1245 = vmatmul.mubr.msk.f32.vlgmr.msra.gmra.mrb[2].mxu1 %vm304_vm1, %v531_v49 }
 0x32a   :  { %v1224_v19 = vpop.f32.mrb[0].mxu1 }
 0x32b   :  { %v295_v20 = vpop.f32.mrb[1].mxu1  ;;  %v301_v5 = vadd.f32 %v1224_v19, %v1105_v1 }
 0x32c   :  { %v296_v8 = vadd.f32 %v1105_v1, %v295_v20 }
 0x32d   :  { %v308_v10 = vsel %vm304_vm1, %v301_v5, 0.0 }
 0x32e   :  { %v305_v11 = vsel %vm304_vm1, %v296_v8, 0.0 }
 0x332   :  { %v1246_v42 = vpop.f32.mrb[2].mxu1 }
 0x333   :  { %v619_v21 = vadd.f32 %v1246_v42, %v1115_v6  ;;  %v613_v22 = vpop.f32.mrb[3].mxu1 }
 0x334   :  { %v614_v23 = vadd.f32 %v1115_v6, %v613_v22 }
 0x335   :  { %v625_v24 = vsel %vm304_vm1, %v619_v21, 0.0 }
 0x336   :  { %626 = vadd.xlane.f32.xlu1 %v625_v24  ;;  %v622_v47 = vsel %vm304_vm1, %v614_v23, 0.0 }
 0x337   :  { %623 = vadd.xlane.f32.xlu0 %v622_v47 }
 0x3c3   :  { %v627_v25 = vpop.xlane.xlu1 %626 }
 0x3c4   :  { %v629_v27 = vmul.f32 0.03125, %v627_v25  ;;  %v624_v29 = vpop.xlane.xlu0 %623 }
 0x3c5   :  { %v628_v30 = vmul.f32 0.03125, %v624_v29  ;;  %v803_v29 = vld [vmem:[%s1795_s2 + $0xe8] sm:$0xff] }
 0x3c6   :  { %v631_v31 = vsub.f32 %v619_v21, %v629_v27  ;;  %v802_v27 = vld [vmem:[%s1795_s2 + $0xe0] sm:$0xff] }
 0x3c7   :  { %v630_v33 = vsub.f32 %v614_v23, %v628_v30  ;;  %v804_v30 = vld [vmem:[%s1795_s2 + $0xf0] sm:$0xff] }
 0x3c8   :  { %v633_v35 = vmul.f32 %v631_v31, %v631_v31 }
 0x3c9   :  { %v632_v36 = vmul.f32 %v630_v33, %v630_v33 }
 0x3ca   :  { %v637_v37 = vsel %vm304_vm1, %v633_v35, 0.0 }
 0x3cb   :  { %638 = vadd.xlane.f32.xlu1 %v637_v37  ;;  %v634_v38 = vsel %vm304_vm1, %v632_v36, 0.0  ;;  %v806_v36 = vld [vmem:[%s1795_s2 + $0x100] sm:$0xff]  ;;  %v807_v37 = vld [vmem:[%s1795_s2 + $0x108] sm:$0xff] }
 0x3cc   :  { %635 = vadd.xlane.f32.xlu0 %v634_v38  ;;  %v1352_v38 = vpack.c.bf16 %v807_v37, %v806_v36  ;;  %v993_v36 = vld [vmem:[%s1795_s2 + $0x138] sm:$0xff] }
 0x458   :  { %v639_v50 = vpop.xlane.xlu1 %638 }
 0x459   :  { %v641_v51 = vmul.f32 0.03125, %v639_v50  ;;  %v636_v52 = vpop.xlane.xlu0 %635 }
 0x45a   :  { %v640_v53 = vmul.f32 0.03125, %v636_v52 }
 0x45b   :  { %v643_v54 = vadd.f32 1e-05, %v641_v51 }
 0x45c   :  { %v642_v55 = vadd.f32 1e-05, %v640_v53 }
 0x45d   :  { %1397 = vrsqrt.f32 %v643_v54  ;;  %v1123_v54 = vld [vmem:[%s1796_s3 + $0xd] ss:$0 sm:$0xff] }
 0x45e   :  { %1399 = vrsqrt.f32 %v642_v55 }
 0x467   :  { %v1398_v28 = vpop.eup %1397 }
 0x468   :  { %v1400_v57 = vpop.eup %1399  ;;  %v647_v58 = vmul.f32 %v1398_v28, %v631_v31  ;;  %v1344_v31 = vpack.c.bf16 %v803_v29, %v802_v27 }
 0x469   :  { %v646_v59 = vmul.f32 %v1400_v57, %v630_v33  ;;  %v805_v33 = vld [vmem:[%s1795_s2 + $0xf8] sm:$0xff] }
 0x46a   :  { %v654_v60 = vmul.f32 %v1118_v56, %v647_v58  ;;  %v1348_v35 = vpack.c.bf16 %v805_v33, %v804_v30  ;;  %1345 = vmatprep.subr.bf16.mxu1 %v1344_v31  ;;  %v990_v30 = vld [vmem:[%s1795_s2 + $0x120] sm:$0xff]  ;;  %v992_v33 = vld [vmem:[%s1795_s2 + $0x130] sm:$0xff] }
 0x46b   :  { %v653_v62 = vmul.f32 %v1118_v56, %v646_v59  ;;  %1347 = vmatpush3.bf16.msra.mxu1 %v1344_v31  ;;  %v1124_v56 = vld [vmem:[%s1796_s3 + $0xe] ss:$0 sm:$0xff]  ;;  %v1364_v37 = vpack.c.bf16 %v993_v36, %v992_v33 }
 0x46c   :  { %v661_v0 = vadd.f32 %v1119_v61, %v654_v60  ;;  %1349 = vmatprep.subr.bf16.mxu1 %v1348_v35  ;;  %v991_v31 = vld [vmem:[%s1795_s2 + $0x128] sm:$0xff] }
 0x46d   :  { %v660_v63 = vadd.f32 %v1119_v61, %v653_v62 }
 0x46f   :  { %1255 = vmatprep.mubr.msk.f32.mxu0 %vm304_vm1, %v660_v63  ;;  %1351 = vmatpush3.bf16.msra.mxu1 %v1348_v35  ;;  %v1360_v35 = vpack.c.bf16 %v991_v31, %v990_v30 }
 0x470   :  { %1256 = vmatmul.mubr.msk.f32.vlgmr.msra.gmra.mrb[4].mxu0 %vm304_vm1, %v661_v0  ;;  %1353 = vmatprep.subr.bf16.mxu1 %v1352_v38 }
 0x471   :  { %1361 = vmatprep.subr.bf16.mxu0 %v1360_v35 }
 0x472   :  { %1363 = vmatpush3.bf16.msra.mxu0 %v1360_v35 }
 0x473   :  { %1355 = vmatpush3.bf16.msra.mxu1 %v1352_v38  ;;  %1365 = vmatprep.subr.bf16.mxu0 %v1364_v37 }
 0x474   :  { %1357 = vmatprep.subr.bf16.mxu1 %v1356_v41 }
 0x476   :  { %1367 = vmatpush3.bf16.msra.mxu0 %v1364_v37 }
 0x477   :  { %1359 = vmatpush3.bf16.msra.mxu1 %v1356_v41 }
 0x543   :  { %v1257_v26 = vpop.f32.mrb[4].mxu0 }
 0x544   :  { %v749_v2 = vadd.f32 %v1257_v26, %v1120_v34  ;;  %v743_v3 = vpop.f32.mrb[5].mxu0 }
 0x545   :  { %v744_v4 = vadd.f32 %v1120_v34, %v743_v3 }
 0x546   :  { %v755_v7 = vsel %vm304_vm1, %v749_v2, 0.0 }
 0x547   :  { %756 = vadd.xlane.f32.xlu1 %v755_v7  ;;  %v752_v9 = vsel %vm304_vm1, %v744_v4, 0.0  ;;  %v1108_v7 = vld [vmem:[%s1796_s3 + $0x4] ss:$0 sm:$0xff] }
 0x548   :  { %753 = vadd.xlane.f32.xlu0 %v752_v9 }
 0x54b   :  { %309 = vadd.xlane.f32.xlu1 %v308_v10  ;;  %v1109_v10 = vld [vmem:[%s1796_s3 + $0x5] ss:$0 sm:$0xff] }
 0x54c   :  { %306 = vadd.xlane.f32.xlu0 %v305_v11 }
 0x5d4   :  { %v757_v12 = vpop.xlane.xlu1 %756 }
 0x5d5   :  { %v759_v45 = vmul.f32 0.03125, %v757_v12  ;;  %v754_v13 = vpop.xlane.xlu0 %753 }
 0x5d6   :  { %v758_v32 = vmul.f32 0.03125, %v754_v13 }
 0x5d7   :  { %v761_v14 = vsub.f32 %v749_v2, %v759_v45 }
 0x5d8   :  { %v760_v15 = vsub.f32 %v744_v4, %v758_v32  ;;  %v310_v16 = vpop.xlane.xlu1 %309 }
 0x5d9   :  { %v313_v17 = vmul.f32 0.03125, %v310_v16  ;;  %v307_v18 = vpop.xlane.xlu0 %306  ;;  %v763_v49 = vmul.f32 %v761_v14, %v761_v14 }
 0x5da   :  { %v312_v19 = vmul.f32 0.03125, %v307_v18  ;;  %v762_v20 = vmul.f32 %v760_v15, %v760_v15 }
 0x5db   :  { %v1690_v6 = vsub.f32 %v301_v5, %v313_v17  ;;  %v767_v42 = vsel %vm304_vm1, %v763_v49, 0.0 }
 0x5dc   :  { %v314_v21 = vsub.f32 %v296_v8, %v312_v19  ;;  %768 = vadd.xlane.f32.xlu1 %v767_v42  ;;  %v764_v22 = vsel %vm304_vm1, %v762_v20, 0.0 }
 0x5dd   :  { %765 = vadd.xlane.f32.xlu0 %v764_v22  ;;  %v317_v23 = vmul.f32 %v1690_v6, %v1690_v6 }
 0x5de   :  { %v316_v24 = vmul.f32 %v314_v21, %v314_v21 }
 0x5df   :  { %v321_v47 = vsel %vm304_vm1, %v317_v23, 0.0 }
 0x5e0   :  { %322 = vadd.xlane.f32.xlu1 %v321_v47  ;;  %v318_v25 = vsel %vm304_vm1, %v316_v24, 0.0 }
 0x5e1   :  { %319 = vadd.xlane.f32.xlu0 %v318_v25 }
 0x669   :  { %v769_v43 = vpop.xlane.xlu1 %768 }
 0x66a   :  { %v771_v44 = vmul.f32 0.03125, %v769_v43  ;;  %v766_v46 = vpop.xlane.xlu0 %765 }
 0x66b   :  { %v770_v50 = vmul.f32 0.03125, %v766_v46 }
 0x66c   :  { %v773_v51 = vadd.f32 1e-05, %v771_v44 }
 0x66d   :  { %v772_v52 = vadd.f32 1e-05, %v770_v50  ;;  %v323_v63 = vpop.xlane.xlu1 %322  ;;  %v1128_v50 = vld [vmem:[%s1796_s3 + $0x10] ss:$0 sm:$0xff] }
 0x66e   :  { %1401 = vrsqrt.f32 %v773_v51  ;;  %v320_v62 = vpop.xlane.xlu0 %319  ;;  %v325_v34 = vmul.f32 0.03125, %v323_v63 }
 0x66f   :  { %1403 = vrsqrt.f32 %v772_v52  ;;  %v324_v0 = vmul.f32 0.03125, %v320_v62 }
 0x670   :  { %v327_v26 = vadd.f32 1e-05, %v325_v34 }
 0x671   :  { %v326_v1 = vadd.f32 1e-05, %v324_v0 }
 0x673   :  { %1405 = vrsqrt.f32 %v326_v1 }
 0x674   :  { %1407 = vrsqrt.f32 %v327_v26 }
 0x678   :  { %v1402_v53 = vpop.eup %1401 }
 0x679   :  { %v1404_v55 = vpop.eup %1403  ;;  %v777_v28 = vmul.f32 %v1402_v53, %v761_v14 }
 0x67a   :  { %v776_v57 = vmul.f32 %v1404_v55, %v760_v15  ;;  %v1125_v15 = vld [vmem:[%s1796_s3 + $0xf] ss:$0 sm:$0xff] }
 0x67b   :  { %v784_v58 = vmul.f32 %v1123_v54, %v777_v28 }
 0x67c   :  { %v783_v59 = vmul.f32 %v1123_v54, %v776_v57  ;;  %v1129_v54 = vld [vmem:[%s1796_s3 + $0x11] ss:$0 sm:$0xff] }
 0x67d   :  { %v791_v60 = vadd.f32 %v1124_v56, %v784_v58  ;;  %v1406_v2 = vpop.eup %1405 }
 0x67e   :  { %v790_v61 = vadd.f32 %v1124_v56, %v783_v59  ;;  %v1408_v3 = vpop.eup %1407  ;;  %v330_v4 = vmul.f32 %v1406_v2, %v314_v21 }
 0x67f   :  { %796 = vrot.lane.b32.xlu1 %v791_v60, %s1446_s11  ;;  %v331_v5 = vmul.f32 %v1408_v3, %v1690_v6 }
 0x680   :  { %794 = vrot.lane.b32.xlu0 %v790_v61, %s1446_s11  ;;  %v337_v8 = vmul.f32 %v1108_v7, %v330_v4 }
 0x681   :  { %v338_v9 = vmul.f32 %v1108_v7, %v331_v5 }
 0x682   :  { %v1735_v12 = vadd.f32 %v1109_v10, %v337_v8 }
 0x683   :  { %v1737_v45 = vadd.f32 %v1109_v10, %v338_v9 }
 0x6f1   :  { %v797_v11 = vpop.permute.xlu1 %796 }
 0x6f2   :  { %v795_v13 = vpop.permute.xlu0 %794  ;;  %v801_v14 = vsel %vm304_vm1, %v1737_v45, %v797_v11 }
 0x6f3   :  { %v800_v32 = vsel %vm304_vm1, %v1735_v12, %v795_v13 }
 0x6f4   :  { %1274 = vmatprep.mubr.msk.f32.mxu1 %vm33_vm0, %v800_v32 }
 0x6f5   :  { %1275 = vmatmul.mubr.msk.f32.vlgmr.msra.gmra.mrb[4].mxu1 %vm33_vm0, %v801_v14 }
 0x7c8   :  { %v1276_v16 = vpop.f32.mrb[4].mxu1 }
 0x7c9   :  { %v893_v17 = vadd.f32 %v1276_v16, %v1125_v15  ;;  %v887_v18 = vpop.f32.mrb[5].mxu1 }
 0x7ca   :  { %v888_v49 = vadd.f32 %v1125_v15, %v887_v18 }
 0x7cb   :  { %v899_v19 = vsel %vm304_vm1, %v893_v17, 0.0 }
 0x7cc   :  { %900 = vadd.xlane.f32.xlu0 %v899_v19  ;;  %v896_v20 = vsel %vm304_vm1, %v888_v49, 0.0 }
 0x7cd   :  { %897 = vadd.xlane.f32.xlu1 %v896_v20 }
 0x859   :  { %v901_v6 = vpop.xlane.xlu0 %900 }
 0x85a   :  { %v903_v42 = vmul.f32 0.03125, %v901_v6  ;;  %v898_v21 = vpop.xlane.xlu1 %897 }
 0x85b   :  { %v902_v22 = vmul.f32 0.03125, %v898_v21 }
 0x85c   :  { %v905_v23 = vsub.f32 %v893_v17, %v903_v42 }
 0x85d   :  { %v904_v24 = vsub.f32 %v888_v49, %v902_v22 }
 0x85e   :  { %v907_v47 = vmul.f32 %v905_v23, %v905_v23 }
 0x85f   :  { %v906_v25 = vmul.f32 %v904_v24, %v904_v24 }
 0x860   :  { %v911_v27 = vsel %vm304_vm1, %v907_v47, 0.0 }
 0x861   :  { %912 = vadd.xlane.f32.xlu1 %v911_v27  ;;  %v908_v29 = vsel %vm304_vm1, %v906_v25, 0.0 }
 0x862   :  { %909 = vadd.xlane.f32.xlu0 %v908_v29 }
 0x8ee   :  { %v913_v38 = vpop.xlane.xlu1 %912 }
 0x8ef   :  { %v915_v39 = vmul.f32 0.03125, %v913_v38  ;;  %v910_v40 = vpop.xlane.xlu0 %909 }
 0x8f0   :  { %v914_v41 = vmul.f32 0.03125, %v910_v40 }
 0x8f1   :  { %v917_v43 = vadd.f32 1e-05, %v915_v39 }
 0x8f2   :  { %v916_v44 = vadd.f32 1e-05, %v914_v41 }
 0x8f3   :  { %1409 = vrsqrt.f32 %v917_v43 }
 0x8f4   :  { %1411 = vrsqrt.f32 %v916_v44  ;;  %v1130_v44 = vld [vmem:[%s1796_s3 + $0x12] ss:$0 sm:$0xff] }
 0x8fd   :  { %v1410_v46 = vpop.eup %1409 }
 0x8fe   :  { %v1412_v51 = vpop.eup %1411  ;;  %v921_v52 = vmul.f32 %v1410_v46, %v905_v23 }
 0x8ff   :  { %v920_v53 = vmul.f32 %v1412_v51, %v904_v24 }
 0x900   :  { %v928_v55 = vmul.f32 %v1128_v50, %v921_v52 }
 0x901   :  { %v927_v28 = vmul.f32 %v1128_v50, %v920_v53 }
 0x902   :  { %v935_v56 = vadd.f32 %v1129_v54, %v928_v55 }
 0x903   :  { %v934_v57 = vadd.f32 %v1129_v54, %v927_v28 }
 0x904   :  { %v939_v58 = vmul.f32 0.70710677, %v935_v56  ;;  %v937_v40 = vmul.f32 0.5, %v935_v56 }
 0x905   :  { %v938_v59 = vmul.f32 0.70710677, %v934_v57  ;;  %v936_v38 = vmul.f32 0.5, %v934_v57 }
 0x906   :  { %v945_v60 = vand.u32 2147483647, %v939_v58  ;;  %vm941_vm6 = vcmp.ge.f32.partialorder %v939_v58, 0.0 }
 0x907   :  { %v944_v61 = vand.u32 2147483647, %v938_v59  ;;  %vm940_vm7 = vcmp.ge.f32.partialorder %v938_v59, 0.0  ;;  %v943_v31 = vsel %vm941_vm6, 1.0, %v1445_v48 }
 0x908   :  { %v947_v62 = vmul.f32 0.3275911, %v945_v60  ;;  %v973_v1 = vsub.f32 0.0, %v945_v60  ;;  %v942_v33 = vsel %vm940_vm7, 1.0, %v1445_v48 }
 0x909   :  { %v946_v63 = vmul.f32 0.3275911, %v944_v61  ;;  %v972_v26 = vsub.f32 0.0, %v944_v61 }
 0x90a   :  { %v949_v0 = vadd.f32 1.0, %v947_v62  ;;  %v975_v3 = vmul.f32 %v973_v1, %v945_v60 }
 0x90b   :  { %v948_v34 = vadd.f32 1.0, %v946_v63  ;;  %v974_v5 = vmul.f32 %v972_v26, %v944_v61 }
 0x90c   :  { %1413 = vrcp.f32 %v949_v0  ;;  %v978_v11 = vmul.f32 1.442695, %v975_v3 }
 0x90d   :  { %1415 = vrcp.f32 %v948_v34  ;;  %v976_v13 = vmul.f32 1.442695, %v974_v5 }
 0x90e   :  { %1417 = vpow2.f32 %v978_v11 }
 0x90f   :  { %1419 = vpow2.f32 %v976_v13 }
 0x916   :  { %v1414_v2 = vpop.eup %1413 }
 0x917   :  { %v1416_v4 = vpop.eup %1415  ;;  %v955_v7 = vmul.f32 1.0614054, %v1414_v2 }
 0x918   :  { %v954_v8 = vmul.f32 1.0614054, %v1416_v4  ;;  %v1418_v23 = vpop.eup %1417 }
 0x919   :  { %v957_v9 = vadd.f32 -1.4531521, %v955_v7  ;;  %v1420_v47 = vpop.eup %1419 }
 0x91a   :  { %v956_v10 = vadd.f32 -1.4531521, %v954_v8 }
 0x91b   :  { %v959_v32 = vmul.f32 %v1414_v2, %v957_v9 }
 0x91c   :  { %v958_v14 = vmul.f32 %v1416_v4, %v956_v10 }
 0x91d   :  { %v961_v15 = vadd.f32 1.4214138, %v959_v32 }
 0x91e   :  { %v960_v16 = vadd.f32 1.4214138, %v958_v14 }
 0x91f   :  { %v963_v17 = vmul.f32 %v1414_v2, %v961_v15 }
 0x920   :  { %v962_v18 = vmul.f32 %v1416_v4, %v960_v16 }
 0x921   :  { %v965_v49 = vadd.f32 -0.28449672, %v963_v17 }
 0x922   :  { %v964_v19 = vadd.f32 -0.28449672, %v962_v18 }
 0x923   :  { %v967_v20 = vmul.f32 %v1414_v2, %v965_v49 }
 0x924   :  { %v966_v6 = vmul.f32 %v1416_v4, %v964_v19 }
 0x925   :  { %v969_v42 = vadd.f32 0.2548296, %v967_v20 }
 0x926   :  { %v968_v21 = vadd.f32 0.2548296, %v966_v6 }
 0x927   :  { %v971_v22 = vmul.f32 %v1414_v2, %v969_v42 }
 0x928   :  { %v970_v24 = vmul.f32 %v1416_v4, %v968_v21 }
 0x929   :  { %v981_v25 = vmul.f32 %v1418_v23, %v971_v22 }
 0x92a   :  { %v980_v27 = vmul.f32 %v1420_v47, %v970_v24 }
 0x92b   :  { %v983_v29 = vsub.f32 1.0, %v981_v25 }
 0x92c   :  { %v982_v30 = vsub.f32 1.0, %v980_v27 }
 0x92d   :  { %v985_v35 = vmul.f32 %v983_v29, %v943_v31 }
 0x92e   :  { %v984_v36 = vmul.f32 %v982_v30, %v942_v33 }
 0x92f   :  { %v987_v37 = vadd.f32 1.0, %v985_v35 }
 0x930   :  { %v986_v39 = vadd.f32 1.0, %v984_v36 }
 0x931   :  { %v989_v43 = vmul.f32 %v987_v37, %v937_v40 }
 0x932   :  { %v988_v41 = vmul.f32 %v986_v39, %v936_v38 }
 0x934   :  { %1285 = vmatprep.mubr.msk.f32.mxu0 %vm304_vm1, %v988_v41 }
 0x935   :  { %1286 = vmatmul.mubr.msk.f32.vlgmr.msra.gmra.mrb[6].mxu0 %vm304_vm1, %v989_v43 }
 0xa08   :  { %v1287_v46 = vpop.f32.mrb[6].mxu0 }
 0xa09   :  { %v1077_v50 = vadd.f32 %v1287_v46, %v1130_v44  ;;  %v1071_v51 = vpop.f32.mrb[7].mxu0 }
 0xa0a   :  { %v1072_v48 = vadd.f32 %v1130_v44, %v1071_v51 }
 0xa0b   :  { %v1081_v52 = vadd.f32 %v1077_v50, %v1737_v45 }
 0xa0c   :  { %v1080_v53 = vadd.f32 %v1072_v48, %v1735_v12 }
 0xa0d   :  { %1083 = vst.msk [vmem:[#allocation2 + $0x8] sm:$0xff] %vm304_vm1, %v1081_v52 }
 0xa0e   :  { %1082 = vst.msk [vmem:[#allocation2] sm:$0xff] %vm304_vm1, %v1080_v53 }
 0xa0f   :  { %1432 = shalt.err (!%p1429_p4)
}
 0xa10   :  { %s1433_s7 = scalar_lea.hbm %s1797_s4, 256 }
 0xa11   :  { %p1434_p5 = scmp.ne.s32.totalorder %s1797_s4, %s1433_s7  ;;  %p1437_p6 = scmp.lt.u32.totalorder %s1433_s7, %s1797_s4 }
 0xa13   :  { %p1439_p7 = pnand %p1437_p6, %p1434_p5 }
 0xa15   :  { %1442 = shalt.err (!%p1439_p7)
}
 0xa16   :  { %s1448_s12 = smov 128   ;;  %s1449_s13 = smov 8  }
 0xa17   :  { %1095 = dma.vmem_to_hbm [thread:$0]  %s1090_s30, 256, %s1797_s4, [#allocation3], %s1448_s12, %s1448_s12, %s1449_s13  }
 0xa18   :  { %1443 = dma.done.wait [#allocation3], 256  }
 0xa19   :  { %1444 = vsyncadd [#allocation3], 4294967040 }
 0xa1a   :  { %1099 = vsyncpa [#allocation3], 1 }

</bundles_post_ra>
